<compile_context>
chip_gen: v6e
topology: v6e:2x2x1
jax: 0.10.0
libtpu: 0.0.40
codegen_flags: <defaults>
</compile_context>

<pallas_src>
import math
import numpy as np

import jax
import jax.numpy as jnp
from jax.experimental import pallas as pl
from jax.experimental.pallas import tpu as pltpu


SCALES = sorted([2.0, 1.5, 1.0, 0.5, 0.1], reverse=True)


# ---------------------------------------------------------------------------
# Exact PyTorch resampling / conv-zero-padding coefficient matrices (host numpy).
# ---------------------------------------------------------------------------
def adaptive_pool_matrix(out_size, in_size):
    """A[out,in] s.t. y = A @ x == F.adaptive_avg_pool1d semantics."""
    A = np.zeros((out_size, in_size), np.float32)
    for i in range(out_size):
        start = (i * in_size) // out_size
        end = -(-((i + 1) * in_size) // out_size)  # ceil
        A[i, start:end] = 1.0 / float(end - start)
    return A


def bilinear_matrix(out_size, in_size):
    """B[out,in] for linear interpolation with align_corners=True."""
    B = np.zeros((out_size, in_size), np.float32)
    if out_size == 1:
        B[0, 0] = 1.0
        return B
    for i in range(out_size):
        src = i * (in_size - 1) / (out_size - 1)
        lo = int(np.floor(src))
        hi = min(lo + 1, in_size - 1)
        frac = src - lo
        B[i, lo] += 1.0 - frac
        B[i, hi] += frac
    return B


def shift_matrix(n, d):
    """(S @ M)[i] = M[i+d] with zero fill (== zero padding of a 3x3 conv)."""
    return np.eye(n, n, d, dtype=np.float32)


def _pick_hw_tile(hw, target=4096):
    """H*W tile for the pointwise kernels: full if small, else a multiple of 128."""
    if hw <= target:
        return hw
    for t in range(target, 127, -128):
        if hw % t == 0:
            return t
    return hw


def _pick_c_tile(c, cap=32):
    """Largest divisor of C that is <= cap (sweep `cap` per generation in production)."""
    for t in range(min(c, cap), 0, -1):
        if c % t == 0:
            return t
    return c


# ---------------------------------------------------------------------------
# Kernels 1 & 3: pointwise (1x1) conv (BN scale folded into bf16 weights) +
# shift + PReLU.  Lane-dense (B, C, H*W) layout, grid over (batch, HW tiles).
# ---------------------------------------------------------------------------
def _pointwise_kernel(x_ref, w_ref, sh_ref, al_ref, o_ref):
    w = w_ref[...]                                            # (Cout, Cin) bf16
    y = jnp.dot(w, x_ref[0].astype(w.dtype),
                preferred_element_type=jnp.float32)           # (Cout, T) f32
    y = y + sh_ref[...]
    o_ref[0] = jnp.where(y > 0, y, al_ref[...] * y)


def pointwise_conv_prelu(x_flat, w, shift, alpha):
    B, Cin, HW = x_flat.shape
    Cout = w.shape[0]
    T = _pick_hw_tile(HW)
    return pl.pallas_call(
        _pointwise_kernel,
        out_shape=jax.ShapeDtypeStruct((B, Cout, HW), jnp.float32),
        grid=(B, HW // T),
        in_specs=[
            pl.BlockSpec((1, Cin, T), lambda b, t: (b, 0, t)),
            pl.BlockSpec((Cout, Cin), lambda b, t: (0, 0)),
            pl.BlockSpec((Cout, 1), lambda b, t: (0, 0)),
            pl.BlockSpec((Cout, 1), lambda b, t: (0, 0)),
        ],
        out_specs=pl.BlockSpec((1, Cout, T), lambda b, t: (b, 0, t)),
        compiler_params=pltpu.CompilerParams(
            dimension_semantics=("parallel", "parallel")),
    )(x_flat, w, shift.reshape(Cout, 1), alpha.reshape(Cout, 1))


# ---------------------------------------------------------------------------
# Kernel 2: fused pyramid branches + merge layer.  Grid = (B, C // Ct).
# Per scale s and channel tile:
#   non-identity: tw[kw] = (Ct*H, W) @ AwT[s,kw]            (shared resize∘shift∘resize)
#                 v[kh]  = sum_kw dwm[c,s,kh,kw] * tw[kw]   (per-channel taps, VPU)
#                 branch = sum_kh Ah[s,kh] @_c v[kh]        (batched; shared (H,H) matrix)
#   identity    : branch = 3x3 depthwise conv via pltpu.roll + taps
#   act   = PReLU(branch + b1[s])                           (merge BN shift + PReLU)
#   g_acc += grouped-3x3(act, gwm[:,s])  via roll + taps    (channel shuffle implicit)
# Output = g_acc (grouped-conv BN scale folded into gwm; its shift folded downstream).
# ---------------------------------------------------------------------------
def _fused_kernel(x_ref, ah_ref, awt_ref, dwm_ref, gwm_ref, b1_ref, a1_ref, o_ref):
    _, Ct, H, W = x_ref.shape
    f32 = jnp.float32

    xp = x_ref[0]                                             # (Ct, H, W) f32
    x2d_bf = xp.astype(jnp.bfloat16).reshape(Ct * H, W)       # leading-dim merge (layout-free)

    # Border masks for the zero-filled +-1 shifts (shared across channels/scales).
    row = jax.lax.broadcasted_iota(jnp.int32, (H, W), 0)
    col = jax.lax.broadcasted_iota(jnp.int32, (H, W), 1)
    mask_h = {1: (row < H - 1).astype(f32), -1: (row > 0).astype(f32)}
    mask_w = {1: (col < W - 1).astype(f32), -1: (col > 0).astype(f32)}

    def shift_h(t, d):          # out[i] = t[i+d], zero fill (sublane roll, XLU slot)
        if d == 0:
            return t
        return pltpu.roll(t, (-d) % H, 1) * mask_h[d]

    def shift_w(t, d):          # out[j] = t[j+d], zero fill (lane roll, XLU slot)
        if d == 0:
            return t
        return pltpu.roll(t, (-d) % W, 2) * mask_w[d]

    def conv3x3(u, taps):
        """Zero-padded per-channel 3x3 conv of u (Ct,H,W); taps = 9 x (Ct,1,1)."""
        wsh = [shift_w(u, kw - 1) for kw in range(3)]
        out = None
        for kh in range(3):
            v = (taps[kh * 3] * wsh[0] + taps[kh * 3 + 1] * wsh[1]
                 + taps[kh * 3 + 2] * wsh[2])
            sv = shift_h(v, kh - 1)
            out = sv if out is None else out + sv
        return out

    dwm = dwm_ref[...]          # (Ct, n_scales, 9)  depthwise taps * merge-BN scale
    gwm = gwm_ref[...]          # (Ct, n_scales, 9)  grouped-conv taps * its BN scale
    b1 = b1_ref[...]            # (Ct, n_scales, 1)  merge-BN shift
    a1 = a1_ref[...]            # (Ct, n_scales, 1)  merge PReLU alpha

    g_acc = jnp.zeros((Ct, H, W), f32)                        # single live accumulator
    ni = 0                                                    # index into AH/AWT stacks
    for s, sc in enumerate(SCALES):
        dtaps = [dwm[:, s:s + 1, k:k + 1] for k in range(9)]  # (Ct,1,1) each, no reshape
        if sc == 1.0:
            branch = conv3x3(xp, dtaps)
        else:
            # W pass: unbatched big-M matmuls (Ct*H, W) @ (W, W), f32 accumulation.
            tw = []
            for kw in range(3):
                t2 = jnp.dot(x2d_bf, awt_ref[ni, kw], preferred_element_type=f32)
                tw.append(t2.reshape(Ct, H, W))
            branch = jnp.zeros((Ct, H, W), f32)
            for kh in range(3):
                v = (dtaps[kh * 3] * tw[0] + dtaps[kh * 3 + 1] * tw[1]
                     + dtaps[kh * 3 + 2] * tw[2])
                # H pass: shared (H,H) matrix, batched over the channel tile.
                ahb = jnp.broadcast_to(ah_ref[ni, kh], (Ct, H, H))
                branch = branch + jnp.einsum(
                    "cia,caj->cij", ahb, v.astype(jnp.bfloat16),
                    preferred_element_type=f32)
            ni += 1
        t = branch + b1[:, s:s + 1, :]
        act = jnp.where(t > 0, t, a1[:, s:s + 1, :] * t)
        gtaps = [gwm[:, s:s + 1, k:k + 1] for k in range(9)]
        g_acc = g_acc + conv3x3(act, gtaps)

    o_ref[0] = g_acc


def fused_pyramid_merge(xp, prep):
    B, C, H, W = xp.shape
    Ct = _pick_c_tile(C)
    n = len(SCALES)
    AH, AWT = prep["AH"], prep["AWT"]

    # vmem budget (v7x has only 64 MiB physical); only raise the limit when needed.
    per_step = (2 * Ct * H * W * 4 + AH.size * 2 + AWT.size * 2
                + 2 * Ct * n * 9 * 4 + 2 * Ct * n * 4)
    est = 2 * per_step + (4 << 20)
    cp = dict(dimension_semantics=("parallel", "parallel"))
    if est > (16 << 20):
        cp["vmem_limit_bytes"] = int(min(est, 64 << 20))
    # NOTE: AH/AWT have constant index_maps; pipeline_mode=pl.Buffered(1) would halve
    # their VMEM share (left at default here for portability).

    return pl.pallas_call(
        _fused_kernel,
        out_shape=jax.ShapeDtypeStruct((B, C, H, W), jnp.float32),
        grid=(B, C // Ct),
        in_specs=[
            pl.BlockSpec((1, Ct, H, W), lambda b, c: (b, c, 0, 0)),
            pl.BlockSpec(AH.shape, lambda b, c: (0, 0, 0, 0)),
            pl.BlockSpec(AWT.shape, lambda b, c: (0, 0, 0, 0)),
            pl.BlockSpec((Ct, n, 9), lambda b, c: (c, 0, 0)),
            pl.BlockSpec((Ct, n, 9), lambda b, c: (c, 0, 0)),
            pl.BlockSpec((Ct, n, 1), lambda b, c: (c, 0, 0)),
            pl.BlockSpec((Ct, n, 1), lambda b, c: (c, 0, 0)),
        ],
        out_specs=pl.BlockSpec((1, Ct, H, W), lambda b, c: (b, c, 0, 0)),
        compiler_params=pltpu.CompilerParams(**cp),
    )(xp, AH, AWT, prep["dwm"], prep["gwm"], prep["b1"], prep["a1"])


# ---------------------------------------------------------------------------
# Parameters (deterministic, in-script), eval-mode BN folded to affine.
# ---------------------------------------------------------------------------
def _fold_bn(gamma, beta, mean, var, eps=1e-5):
    scale = gamma / jnp.sqrt(var + eps)
    shift = beta - mean * scale
    return scale, shift


def init_params(key, in_ch, proj_ch, out_ch, n_scales):
    keys = iter(jax.random.split(key, 64))

    def nrm(shape, s=0.2):
        return s * jax.random.normal(next(keys), shape, jnp.float32)

    def uni(shape, lo, hi):
        return jax.random.uniform(next(keys), shape, jnp.float32, lo, hi)

    def bn(ch):
        gamma = uni((ch,), 0.8, 1.2)
        beta = nrm((ch,))
        mean = nrm((ch,))
        var = uni((ch,), 0.5, 1.5)
        return _fold_bn(gamma, beta, mean, var)

    p = {}
    p["proj_w"] = nrm((proj_ch, in_ch))
    p["proj_scale"], p["proj_shift"] = bn(proj_ch)
    p["proj_alpha"] = jnp.full((proj_ch,), 0.25, jnp.float32)
    p["dw"] = [nrm((proj_ch, 9)) for _ in range(n_scales)]
    cc = proj_ch * n_scales
    p["m_bn_scale"], p["m_bn_shift"] = bn(cc)
    p["m_alpha"] = jnp.full((cc,), 0.25, jnp.float32)
    p["gw"] = nrm((proj_ch, n_scales * 9))
    p["g_bn_scale"], p["g_bn_shift"] = bn(proj_ch)
    p["final_w"] = nrm((out_ch, proj_ch))
    p["br_scale"], p["br_shift"] = bn(out_ch)
    p["br_alpha"] = jnp.full((out_ch,), 0.25, jnp.float32)
    return p


# ---------------------------------------------------------------------------
# Host-side folding: resize∘shift∘resize matrices, channel-major tap tables,
# BN scales folded into weights, grouped-BN shift folded through the final 1x1.
# ---------------------------------------------------------------------------
def prepare(p, H, W, proj_ch):
    C = proj_ch
    n = len(SCALES)
    dw = [np.asarray(d) for d in p["dw"]]                      # (C, 9) each
    m_scale = np.asarray(p["m_bn_scale"]).reshape(n, C)
    m_shift = np.asarray(p["m_bn_shift"]).reshape(n, C)
    m_alpha = np.asarray(p["m_alpha"]).reshape(n, C)
    gw = np.asarray(p["gw"])                                   # (C, n*9)
    s2 = np.asarray(p["g_bn_scale"])
    b2 = np.asarray(p["g_bn_shift"])

    AH, AWT = [], []
    for sc in SCALES:
        if sc == 1.0:
            continue                                           # handled via rolls in-kernel
        h_s = int(math.ceil(H * sc)); h_s = h_s if h_s > 5 else 5
        w_s = int(math.ceil(W * sc)); w_s = w_s if w_s > 5 else 5
        if sc > 1.0:
            pre_h, pre_w = bilinear_matrix(h_s, H), bilinear_matrix(w_s, W)
            post_h, post_w = adaptive_pool_matrix(H, h_s), adaptive_pool_matrix(W, w_s)
        else:
            pre_h, pre_w = adaptive_pool_matrix(h_s, H), adaptive_pool_matrix(w_s, W)
            post_h, post_w = bilinear_matrix(H, h_s), bilinear_matrix(W, w_s)
        # Ah[kh] = post_h @ Sh(kh-1) @ pre_h   (H,H);  AwT[kw] = (post_w @ Sw(kw-1) @ pre_w)^T
        AH.append(np.stack([post_h @ shift_matrix(h_s, d) @ pre_h for d in (-1, 0, 1)]))
        AWT.append(np.stack([(post_w @ shift_matrix(w_s, d) @ pre_w).T for d in (-1, 0, 1)]))
    AH = np.stack(AH)          # (n_non_identity, 3, H, H)
    AWT = np.stack(AWT)        # (n_non_identity, 3, W, W)

    # Channel-major per-channel tables (avoids the (n,C,1,1) VMEM padding blow-up).
    dwm = np.stack([dw[s] * m_scale[s][:, None] for s in range(n)], axis=1)            # (C,n,9)
    gwm = np.stack([gw[:, s * 9:(s + 1) * 9] * s2[:, None] for s in range(n)], axis=1)  # (C,n,9)
    b1 = np.ascontiguousarray(m_shift.T).reshape(C, n, 1)
    a1 = np.ascontiguousarray(m_alpha.T).reshape(C, n, 1)

    # proj 1x1: fold BN scale into the weight.
    proj_w = np.asarray(p["proj_w"]) * np.asarray(p["proj_scale"])[:, None]
    # final 1x1 + br: fold grouped-conv BN shift (b2) and br BN scale/shift.
    wf = np.asarray(p["final_w"])
    br_s = np.asarray(p["br_scale"]); br_b = np.asarray(p["br_shift"])
    final_w = br_s[:, None] * wf
    final_shift = br_s * (wf @ b2) + br_b

    return dict(
        proj_w=jnp.asarray(proj_w, jnp.bfloat16),
        proj_shift=jnp.asarray(p["proj_shift"], jnp.float32),
        proj_alpha=jnp.asarray(p["proj_alpha"], jnp.float32),
        AH=jnp.asarray(AH, jnp.bfloat16),
        AWT=jnp.asarray(AWT, jnp.bfloat16),
        dwm=jnp.asarray(dwm, jnp.float32),
        gwm=jnp.asarray(gwm, jnp.float32),
        b1=jnp.asarray(b1, jnp.float32),
        a1=jnp.asarray(a1, jnp.float32),
        final_w=jnp.asarray(final_w, jnp.bfloat16),
        final_shift=jnp.asarray(final_shift, jnp.float32),
        final_alpha=jnp.asarray(p["br_alpha"], jnp.float32),
    )


# ---------------------------------------------------------------------------
# Full EPP forward
# ---------------------------------------------------------------------------
def epp_forward(x, prep):
    B, Cin, H, W = x.shape
    C = prep["proj_w"].shape[0]
    Cout = prep["final_w"].shape[0]

    xp = pointwise_conv_prelu(x.reshape(B, Cin, H * W), prep["proj_w"],
                              prep["proj_shift"], prep["proj_alpha"])
    xp = xp.reshape(B, C, H, W)

    merged = fused_pyramid_merge(xp, prep)

    out = pointwise_conv_prelu(merged.reshape(B, C, H * W), prep["final_w"],
                               prep["final_shift"], prep["final_alpha"])
    return out.reshape(B, Cout, H, W)


if __name__ == "__main__":
    B, in_ch, proj_ch, out_ch, H, W = 2, 4, 8, 8, 16, 16
    key = jax.random.PRNGKey(0)
    kx, kp = jax.random.split(key)
    x = jax.random.normal(kx, (B, in_ch, H, W), jnp.float32)
    params = init_params(kp, in_ch, proj_ch, out_ch, len(SCALES))
    prep = prepare(params, H, W, proj_ch)

    y = epp_forward(x, prep)
    y = jax.block_until_ready(y)

    assert y.shape == (B, out_ch, H, W), y.shape
    assert bool(jnp.all(jnp.isfinite(y)))
    print("KERNEL_OK")
</pallas_src>

<mosaic_0001>
module attributes {stable_mosaic.version = 11 : i64} {
  func.func @_pointwise_kernel(%arg0: i32, %arg1: i32, %arg2: memref<1x4x256xf32, #tpu.memory_space<vmem>>, %arg3: memref<8x4xbf16, #tpu.memory_space<vmem>>, %arg4: memref<8x1xf32, #tpu.memory_space<vmem>>, %arg5: memref<8x1xf32, #tpu.memory_space<vmem>>, %arg6: memref<1x8x256xf32, #tpu.memory_space<vmem>>) attributes {dimension_semantics = [#tpu.dimension_semantics<parallel>, #tpu.dimension_semantics<parallel>], iteration_bounds = array<i64: 2, 1>, scalar_prefetch = 0 : i64, scratch_operands = 0 : i64, tpu.core_type = #tpu.core_type<tc>, window_params = [{transform_indices = @transform_0, window_bounds = array<i64: 1, 4, 256>}, {pipeline_mode = #tpu.pipeline_mode<synchronous>, transform_indices = @transform_1, window_bounds = array<i64: 8, 4>}, {pipeline_mode = #tpu.pipeline_mode<synchronous>, transform_indices = @transform_2, window_bounds = array<i64: 8, 1>}, {pipeline_mode = #tpu.pipeline_mode<synchronous>, transform_indices = @transform_3, window_bounds = array<i64: 8, 1>}, {transform_indices = @transform_4, window_bounds = array<i64: 1, 8, 256>}]} {
    %c0 = arith.constant 0 : index
    %c0_0 = arith.constant 0 : index
    %0 = vector.load %arg3[%c0, %c0_0] : memref<8x4xbf16, #tpu.memory_space<vmem>>, vector<8x4xbf16>
    %c0_1 = arith.constant 0 : index
    %c0_2 = arith.constant 0 : index
    %c0_3 = arith.constant 0 : index
    %1 = vector.load %arg2[%c0_1, %c0_2, %c0_3] : memref<1x4x256xf32, #tpu.memory_space<vmem>>, vector<1x4x256xf32>
    %2 = vector.shape_cast %1 : vector<1x4x256xf32> to vector<4x256xf32>
    %3 = arith.truncf %2 : vector<4x256xf32> to vector<4x256xbf16>
    %cst = arith.constant dense<0.000000e+00> : vector<8x256xf32>
    %4 = tpu.matmul %0, %3, %cst {dimension_numbers = #tpu.dot_dimension_numbers<[1], [0], [0], [1], [0, 0, 1, 1], [], []>} : vector<8x4xbf16>, vector<4x256xbf16>, vector<8x256xf32> -> vector<8x256xf32>
    %c0_4 = arith.constant 0 : index
    %c0_5 = arith.constant 0 : index
    %5 = vector.load %arg4[%c0_4, %c0_5] : memref<8x1xf32, #tpu.memory_space<vmem>>, vector<8x1xf32>
    %6 = vector.broadcast %5 : vector<8x1xf32> to vector<8x256xf32>
    %7 = arith.addf %4, %6 : vector<8x256xf32>
    %cst_6 = arith.constant 0.000000e+00 : f32
    %8 = vector.broadcast %cst_6 : f32 to vector<8x256xf32>
    %9 = arith.cmpf ogt, %7, %8 : vector<8x256xf32>
    %c0_7 = arith.constant 0 : index
    %c0_8 = arith.constant 0 : index
    %10 = vector.load %arg5[%c0_7, %c0_8] : memref<8x1xf32, #tpu.memory_space<vmem>>, vector<8x1xf32>
    %11 = vector.broadcast %10 : vector<8x1xf32> to vector<8x256xf32>
    %12 = arith.mulf %11, %7 : vector<8x256xf32>
    %13 = arith.select %9, %7, %12 : vector<8x256xi1>, vector<8x256xf32>
    %c0_9 = arith.constant 0 : index
    %c0_10 = arith.constant 0 : index
    %c0_11 = arith.constant 0 : index
    %14 = vector.load %arg6[%c0_9, %c0_10, %c0_11] : memref<1x8x256xf32, #tpu.memory_space<vmem>>, vector<1x8x256xf32>
    %15 = vector.shape_cast %14 : vector<1x8x256xf32> to vector<8x256xf32>
    %16 = vector.shape_cast %13 : vector<8x256xf32> to vector<1x8x256xf32>
    tpu.vector_store %arg6[%c0_9, %c0_10, %c0_11], %16 {strides = array<i32>} : memref<1x8x256xf32, #tpu.memory_space<vmem>>, vector<1x8x256xf32>,
    return
  }
  func.func @transform_0(%arg0: i32, %arg1: i32) -> (i32, i32, i32) {
    %c0_i32 = arith.constant 0 : i32
    %c0_i32_0 = arith.constant 0 : i32
    return %arg0, %c0_i32, %arg1 : i32, i32, i32
  }
  func.func @transform_1(%arg0: i32, %arg1: i32) -> (i32, i32) {
    %c0_i32 = arith.constant 0 : i32
    %c0_i32_0 = arith.constant 0 : i32
    %c0_i32_1 = arith.constant 0 : i32
    return %c0_i32, %c0_i32_0 : i32, i32
  }
  func.func @transform_2(%arg0: i32, %arg1: i32) -> (i32, i32) {
    %c0_i32 = arith.constant 0 : i32
    %c0_i32_0 = arith.constant 0 : i32
    %c0_i32_1 = arith.constant 0 : i32
    return %c0_i32, %c0_i32_0 : i32, i32
  }
  func.func @transform_3(%arg0: i32, %arg1: i32) -> (i32, i32) {
    %c0_i32 = arith.constant 0 : i32
    %c0_i32_0 = arith.constant 0 : i32
    %c0_i32_1 = arith.constant 0 : i32
    return %c0_i32, %c0_i32_0 : i32, i32
  }
  func.func @transform_4(%arg0: i32, %arg1: i32) -> (i32, i32, i32) {
    %c0_i32 = arith.constant 0 : i32
    %c0_i32_0 = arith.constant 0 : i32
    return %arg0, %c0_i32, %arg1 : i32, i32, i32
  }
}

</mosaic_0001>

<bundles_post_ra>
// kernel: tpu_custom_call.1
= control target key start
LH: loop header
LB: loop body
LE: loop exit
PB: predicated region body
PF: predicated region fallthrough
CT: control target
= control target key end

     0   :  { %9 = vsyncpa [#allocation3], 0  ;;  %s694_s0 = inlined_call_operand.vmem [shape: f32[2,4,256], index: 0, kind: input, shape index: {}]   ;;  %s695_s1 = inlined_call_operand.vmem [shape: bf16[8,4], index: 1, kind: input, shape index: {}]   ;;  %s696_s2 = inlined_call_operand.vmem [shape: f32[8,1], index: 2, kind: input, shape index: {}]   ;;  %s697_s3 = inlined_call_operand.vmem [shape: f32[8,1], index: 3, kind: input, shape index: {}]   ;;  %s698_s4 = inlined_call_operand.hbm [shape: f32[2,8,256], index: 4, kind: output, shape index: {}]  }
   0x1   :  { %11 = vsyncpa [#allocation3 + $0x1], 0  ;;  %s580_s15 = smov 0   ;;  %s582_s16 = smov 0  }
   0x2   :  { %s584_s17 = smov 0   ;;  %s586_s18 = smov 0  }
   0x3   :  { %s588_s19 = smov 0   ;;  %s590_s20 = smov 0  }
   0x4 LB: > { %s400_s21 = sadd.s32 4294967295, %s551_s20   ;;  %s401_s22 = sadd.s32 4294967294, %s551_s20   ;;  %s551_s20 = sphi %s590_s20, %s17_s20   ;;  %s547_s19 = sphi %s588_s19, %s705_s19   ;;  %s543_s18 = sphi %s586_s18, %s704_s18   ;;  %s539_s17 = sphi %s584_s17, %s703_s17   ;;  %s535_s16 = sphi %s582_s16, %s702_s16   ;;  %s531_s15 = sphi %s580_s15, %s701_s15  }
   0x5   : > { %s29_s23 = sadd.s32 1, %s547_s19  ;;  %s129_s24 = sadd.s32 1, %s539_s17 }
   0x6   : > { %p31_p0 = scmp.ge.s32.totalorder %s29_s23, 2  ;;  %p139_p1 = scmp.ne.s32.totalorder %s539_s17, %s535_s16 }
   0x7   : > { %p140_p2 = scmp.eq.s32.totalorder %s400_s21, 1  ;;  %p145_p3 = scmp.ne.s32.totalorder %s535_s16, %s531_s15 }
   0x8   : > { %s707_s23 = smov (%p31_p0, %s29_s23), 0  ;;  %p146_p5 = scmp.eq.s32.totalorder %s401_s22, 1 }
   0x9   : > { %p620_p4 = por %p140_p2, %p139_p1  ;;  %s124_s26 = ssub.s32 %s547_s19, %s707_s23 }
   0xa   : > { %p404_p6 = scmp.ge.s32.totalorder %s551_s20, 1  ;;  %p127_p7 = scmp.eq.s32.totalorder %s124_s26, 0 }
   0xb   : > { %p627_p8 = por %p146_p5, %p145_p3  ;;  %p186_p9 = scmp.lt.s32.totalorder %s551_s20, 3 }
   0xc   : > { %s633_s28 = scalar_select %p127_p7, %s539_s17, %s129_s24  }
   0xd   : > { %p187_p10 = pnand %p404_p6, %p186_p9 }
   0xe   : > { %p217_p11 = scmp.lt.s32.totalorder (!%p187_p10), %s543_s18, 1  ;;  %s213_s14 = sand.u32 (!%p187_p10), 1, %s535_s16  }
   0xf   : > { %190 = sbr.rel (%p187_p10) target bundleno = 246 (0xf6), region = 36  ;;  %s405_s21 = sshll.u32 (!%p187_p10), %s213_s14, 4 }
  0x10   : > { %s416_s22 = sshll.u32 (!%p187_p10), %s543_s18, 8  ;;  %s215_s24 = scalar_lea.vmem (!%p187_p10), [#allocation2], %s405_s21 }
  0x11   : > { %s324_s26 = sshll.u32 (!%p187_p10), %s215_s24, 4  ;;  %s308_s6 = scalar_lea.sflag (!%p187_p10), [#allocation3], %s213_s14  ;;  %s325_s26 = int_to_ptr.vmem [resolvable:$true] %s324_s26 }
  0x12   : > { %s475_s7 = scalar_lea.vmem (!%p187_p10), %s325_s26, 256 }
  0x13   : > { %p476_p12 = scmp.ne.s32.totalorder (!%p187_p10), %s325_s26, %s475_s7 }
  0x14   : > { %v553_v0 = vmov 0   ;;  %v235_v1 = vld [vmem:[%s696_s2] sm:$0xff]  ;;  %s218_s5 = scalar_select %p217_p11, %s543_s18, 1  ;;  %vm245_vm0 = vcmask 1041408   ;;  %vm241_vm1 = vcmask 31744  }
  0x15   : > { %284 = vmatprep.mubr.bf16.mxu0 %v553_v0  ;;  %473 = vset.pattern.permute.xlu0 %v553_v0  ;;  %v295_v2 = vld [vmem:[%s697_s3] sm:$0xff]  ;;  %p477_p13 = pnand %p476_p12, %p620_p4  ;;  %s554_s18 = smov [#allocation2]  }
  0x16   : > { %238 = vperm.xlu0 %473, %v235_v1   ;;  %s415_s8 = sshll.u32 %s218_s5, 3  ;;  %v228_v8 = vld [vmem:[%s695_s1] sm:$0xf]  ;;  %s654_s5 = scalar_lea.hbm %s698_s4, %s416_s22 }
  0x17   : > { %s224_s11 = scalar_lea.vmem %s694_s0, %s415_s8  ;;  %p478_p0 = pneg %p477_p13 }
  0x18   : > { %v229_v3 = vld [vmem:[%s224_s11] sm:$0xff]  ;;  %s479_s8 = sshll.u32 %s554_s18, 4  ;;  %s480_s8 = int_to_ptr.vmem [resolvable:$false] %s479_s8 }
  0x19   : > { %v231_v4 = vcombine.high %v229_v3, %v229_v3  ;;  %v233_v5 = vpack.c.bf16 %v229_v3, %v229_v3  ;;  %s481_s9 = scalar_lea.vmem %s480_s8, 512  ;;  %p482_p1 = scmp.lt.s32.totalorder %s325_s26, %s480_s8 }
  0x1a   : > { %298 = vperm.xlu0 %473, %v295_v2   ;;  %p483_p2 = scmp.lt.s32.totalorder %s481_s9, %s475_s7 }
  0x1b   : > { %v234_v6 = vpack.c.bf16 %v231_v4, %v231_v4  ;;  %v247_v7 = vsel %vm245_vm0, %v233_v5, 0 }
  0x1c   : > { %p484_p3 = por %p483_p2, %p482_p1 }
  0x1d   : > { %408 = vmatprep.subr.msk.bf16.mxu0 %vm245_vm0, %v234_v6 }
  0x1e   : > { %267 = vmatpush1.bf16.msra.mxu0 %v247_v7  ;;  %p485_p5 = pnand %p484_p3, %p478_p0 }
  0x21   : > { %409 = vmatmul.mubr.msk.bf16.vlgmr.msra.gmra.mxu0 %vm241_vm1, %v228_v8 }
  0x91   : > { %v239_v9 = vpop.permute.xlu0 %238 }
  0x95   : > { %v299_v12 = vpop.permute.xlu0 %298 }
  0xe1   : > { %v286_v10 = vpop.f32.mrf.mxu0 }
  0xe2   : > { %v287_v11 = vadd.f32 %v286_v10, %v239_v9 }
  0xe3   : > { %v288_v13 = vpop.f32.mrf.mxu0 }
  0xe4   : > { %vm293_vm2 = vcmp.gt.f32.partialorder %v287_v11, 0.0  ;;  %v301_v14 = vmul.f32 %v299_v12, %v287_v11  ;;  %v289_v15 = vadd.f32 %v288_v13, %v239_v9 }
  0xe5   : > { %v290_v16 = vpop.f32.mrf.mxu0 }
  0xe6   : > { %v303_v17 = vsel %vm293_vm2, %v287_v11, %v301_v14  ;;  %vm294_vm3 = vcmp.gt.f32.partialorder %v289_v15, 0.0  ;;  %v302_v18 = vmul.f32 %v299_v12, %v289_v15 }
  0xe7   : > { %v291_v19 = vpop.f32.mrf.mxu0  ;;  %305 = vst [vmem:[%s215_s24] sm:$0xff] %v303_v17 }
  0xe8   : > { %v304_v20 = vsel %vm294_vm3, %v289_v15, %v302_v18 }
  0xe9   : > { %306 = vst [vmem:[%s215_s24 + $0x8] sm:$0xff] %v304_v20 }
  0xea   : > { %488 = shalt.err (!%p485_p5)
}
  0xeb   : > { %s489_s10 = scalar_lea.hbm %s654_s5, 256  ;;  %s493_s13 = scalar_lea.hbm %s698_s4, 512 }
  0xec   : > { %p490_p6 = scmp.ne.s32.totalorder %s654_s5, %s489_s10  ;;  %p494_p10 = scmp.lt.s32.totalorder %s654_s5, %s698_s4 }
  0xed   : > { %p495_p11 = scmp.lt.s32.totalorder %s493_s13, %s489_s10 }
  0xee   : > { %p491_p7 = pnand %p490_p6, %p620_p4 }
  0xef   : > { %p496_p12 = por %p495_p11, %p494_p10 }
  0xf0   : > { %p492_p9 = pneg %p491_p7 }
  0xf2   : > { %p497_p13 = pnand %p496_p12, %p492_p9 }
  0xf4   : > { %500 = shalt.err (!%p497_p13)
}
  0xf5   : > { %417 = dma.vmem_to_hbm [thread:$0]  (%p620_p4), %s325_s26, 256, %s654_s5, %s308_s6  }
  0xf6 PF: > { %p423_p0 = scmp.ge.s32.totalorder %s551_s20, 2  ;;  %s336_s22 = sand.u32 1, %s531_s15  }
  0xf7   : > { %s337_s24 = scalar_lea.sflag [#allocation3], %s336_s22 }
  0xf8   : > { %p420_p1 = pnand %p423_p0, %p627_p8 }
  0xfa   : > { %p421_p2 = pneg %p420_p1 }
  0xfc   : > { %526 = dma.done.wait (%p421_p2), %s337_s24, 256  }
  0xfd   : > { %528 = vsyncadd (%p421_p2), %s337_s24, 4294967040  ;;  %s17_s20 = sadd.s32 1, %s551_s20   ;;  %s701_s15 = smov %s535_s16 }
  0xfe   : > { %p14_p3 = scmp.ge.s32.totalorder %s17_s20, 4   ;;  %s702_s16 = smov %s539_s17 }
  0xff   : > { %s703_s17 = smov %s633_s28  ;;  %s704_s18 = smov %s547_s19 }
 0x100   : > { %s705_s19 = smov %s707_s23  ;;  %16 = sbr.rel (!%p14_p3) target bundleno = 4 (0x4), region = 71 }
 0x105   :  { %342 = vsyncpa [#allocation3], 1 }
 0x106   :  { %344 = vsyncpa [#allocation3 + $0x1], 1 }

</bundles_post_ra>
